<compile_context>
chip_gen: v7x
topology: tpu7x:2x2x1
jax: 0.10.0
libtpu: 0.0.40
codegen_flags: <defaults>
</compile_context>

<pallas_src>
import functools
import numpy as np
import jax
import jax.numpy as jnp
from jax.experimental import pallas as pl
from jax.experimental.pallas import tpu as pltpu


# ----------------------------------------------------------------------------
# Parameter construction (identical math to the PyTorch __init__).
# ----------------------------------------------------------------------------
def make_seasonality_templates(harmonics: int, backcast_size: int, forecast_size: int):
    frequency = np.append(
        np.zeros(1, dtype=float),
        np.arange(harmonics, harmonics / 2 * forecast_size, dtype=float) / harmonics,
    )[None, :]
    backcast_grid = (
        -2 * np.pi * (np.arange(backcast_size, dtype=float)[:, None] / forecast_size) * frequency
    )
    forecast_grid = (
        2 * np.pi * (np.arange(forecast_size, dtype=float)[:, None] / forecast_size) * frequency
    )
    backcast_template = np.concatenate(
        [np.transpose(np.cos(backcast_grid)), np.transpose(np.sin(backcast_grid))], axis=0
    ).astype(np.float32)  # [2P, Tb]
    forecast_template = np.concatenate(
        [np.transpose(np.cos(forecast_grid)), np.transpose(np.sin(forecast_grid))], axis=0
    ).astype(np.float32)  # [2P, Tf]
    return backcast_template, forecast_template


def _round_up(x: int, m: int) -> int:
    return ((x + m - 1) // m) * m


def make_combined_basis(harmonics: int, backcast_size: int, forecast_size: int,
                        out_features: int = 1, compute_dtype=jnp.float32):
    """Constant fused basis M (cast ONCE to compute_dtype here, never per call)."""
    bt, ft = make_seasonality_templates(harmonics, backcast_size, forecast_size)
    P2 = ft.shape[0]                      # harmonic_size
    Tb, Tf, Q = backcast_size, forecast_size, out_features
    K = P2 * (1 + Q)                      # theta width
    FQ = Tf * Q
    Tb_cols = _round_up(Tb, 128)          # lane-dense backcast slab (unmasked stores)
    FQ_cols = _round_up(FQ, 128)          # lane-dense forecast slab
    M = np.zeros((K, Tb_cols + FQ_cols), dtype=np.float32)
    M[:P2, :Tb] = bt
    # theta forecast coeffs are [p, q] with q fastest (theta[:, P2:].reshape(B, P2, Q));
    # forecast slab columns are (t, q) with q fastest -> block structure kron(ft, I_Q).
    M[P2:, Tb_cols:Tb_cols + FQ] = np.kron(ft, np.eye(Q, dtype=np.float32))
    meta = dict(P2=P2, Tb=Tb, Tf=Tf, Q=Q, K=K, FQ=FQ, Tb_cols=Tb_cols, FQ_cols=FQ_cols)
    return jnp.asarray(M, dtype=compute_dtype), meta


# ----------------------------------------------------------------------------
# Pallas kernel: one MXU matmul per batch tile, two lane-dense output writes.
# ----------------------------------------------------------------------------
def _fused_basis_kernel(theta_ref, basis_ref, back_ref, fore_ref, *,
                        tb_cols: int, compute_dtype):
    # In-kernel cast keeps theta f32 in HBM (no wrapper astype / extra HBM pass).
    t = theta_ref[...].astype(compute_dtype)
    acc = jnp.dot(t, basis_ref[...], preferred_element_type=jnp.float32)
    # tb_cols is a multiple of 128 -> both column slices are lane-aligned.
    back_ref[...] = acc[:, :tb_cols]
    fore_ref[...] = acc[:, tb_cols:]


def _physical_vmem_bytes() -> int:
    try:
        info = pltpu.get_tpu_info()
        v = int(getattr(info, "vmem_capacity_bytes", 0))
        if v > 0:
            return v
    except Exception:
        pass
    return 64 * 1024 * 1024  # v7x worst case; conservative for v5e/v6e (128 MiB)


def _plan_tiling(B: int, K: int, n_cols: int, theta_itemsize: int, basis_itemsize: int):
    """Pick the batch tile from the real VMEM budget and compute vmem_limit_bytes."""
    phys = _physical_vmem_bytes()
    budget = int(phys * 0.70)                              # headroom for compiler scratch
    basis_bytes = 2 * K * n_cols * basis_itemsize          # resident, still double-buffered
    per_row = 2 * (K * theta_itemsize + n_cols * 4)        # theta tile + f32 out tiles, x2 buffers
    tb = (budget - basis_bytes) // max(per_row, 1)
    tb = max(8, min(int(tb), 8192))                        # cap raised well above 512
    if B >= 16:
        # >=2 grid iterations so "parallel" shards across both v7x TensorCores.
        tb = min(tb, _round_up(pl.cdiv(B, 2), 8))
    tb = max(8, (tb // 8) * 8)
    tb = min(tb, _round_up(B, 8))
    vmem_limit = int(min(phys, basis_bytes + tb * per_row + (4 << 20)))
    return int(tb), vmem_limit


def seasonality_basis_forward(theta, combined_basis, meta):
    """Pallas equivalent of SeasonalityBasis.forward.

    theta:          [B, 2P*(1+Q)] float32 (PyTorch layout: backcast coeffs first,
                    then forecast coeffs [p, q] with q fastest)
    combined_basis: [K, Tb_cols + FQ_cols] constant from make_combined_basis
    returns (backcast [B, Tb] f32, forecast [B, Tf, Q] f32)
    """
    B, K_in = theta.shape
    K, n_cols = combined_basis.shape
    assert K_in == K, f"theta width {K_in} != harmonic_size*(1+out_features) = {K}"
    Tb, Tf, Q = meta["Tb"], meta["Tf"], meta["Q"]
    FQ, Tb_cols, FQ_cols = meta["FQ"], meta["Tb_cols"], meta["FQ_cols"]

    theta_isz = jnp.dtype(theta.dtype).itemsize
    basis_isz = jnp.dtype(combined_basis.dtype).itemsize
    TB, vmem_limit = _plan_tiling(B, K, n_cols, theta_isz, basis_isz)
    grid = (pl.cdiv(B, TB),)

    cost = pl.CostEstimate(
        flops=2 * B * K * n_cols,
        transcendentals=0,
        bytes_accessed=B * K * theta_isz + K * n_cols * basis_isz + B * n_cols * 4,
    )

    kernel = functools.partial(
        _fused_basis_kernel, tb_cols=Tb_cols, compute_dtype=combined_basis.dtype
    )

    back_pad, fore_pad = pl.pallas_call(
        kernel,
        out_shape=(
            jax.ShapeDtypeStruct((B, Tb_cols), jnp.float32),
            jax.ShapeDtypeStruct((B, FQ_cols), jnp.float32),
        ),
        grid_spec=pltpu.PrefetchScalarGridSpec(
            num_scalar_prefetch=0,
            grid=grid,
            in_specs=[
                pl.BlockSpec((TB, K), lambda i: (i, 0)),       # streamed theta tile
                pl.BlockSpec((K, n_cols), lambda i: (0, 0)),   # VMEM-resident fused basis
            ],
            out_specs=[
                pl.BlockSpec((TB, Tb_cols), lambda i: (i, 0)),
                pl.BlockSpec((TB, FQ_cols), lambda i: (i, 0)),
            ],
        ),
        compiler_params=pltpu.CompilerParams(
            dimension_semantics=("parallel",),   # 2x on v7x once grid >= 2; harmless otherwise
            vmem_limit_bytes=vmem_limit,
        ),
        cost_estimate=cost,
    )(theta, combined_basis)

    # Only the useful bytes are touched here; downstream code can also consume the
    # padded slabs directly to skip even these slices.
    backcast = back_pad if Tb == Tb_cols else back_pad[:, :Tb]
    forecast_flat = fore_pad if FQ == FQ_cols else fore_pad[:, :FQ]
    forecast = forecast_flat.reshape(B, Tf, Q)   # (t, q) q-fastest -> free reshape
    return backcast, forecast


if __name__ == "__main__":
    # Small, deterministic example consistent with the module.
    harmonics = 2
    backcast_size = 16
    forecast_size = 8
    out_features = 2
    B = 8

    # --- f32 compute path (exact parity with the PyTorch module) -------------
    basis_f32, meta = make_combined_basis(
        harmonics, backcast_size, forecast_size, out_features, compute_dtype=jnp.float32
    )
    P2, K = meta["P2"], meta["K"]

    key = jax.random.PRNGKey(0)
    theta = jax.random.normal(key, (B, K), dtype=jnp.float32)

    backcast, forecast = seasonality_basis_forward(theta, basis_f32, meta)
    jax.block_until_ready((backcast, forecast))

    # Pure-numpy float64 reference (same semantics as the PyTorch forward).
    bt_np, ft_np = make_seasonality_templates(harmonics, backcast_size, forecast_size)
    theta_np = np.asarray(theta, dtype=np.float64)
    backcast_theta = theta_np[:, :P2]
    forecast_theta = theta_np[:, P2:].reshape(B, P2, out_features)
    ref_back = np.einsum("bp,pt->bt", backcast_theta, bt_np.astype(np.float64))
    ref_fore = np.einsum("bpq,pt->btq", forecast_theta, ft_np.astype(np.float64))

    assert backcast.shape == (B, backcast_size)
    assert forecast.shape == (B, forecast_size, out_features)
    np.testing.assert_allclose(np.asarray(backcast), ref_back, rtol=1e-3, atol=1e-3)
    np.testing.assert_allclose(np.asarray(forecast), ref_fore, rtol=1e-3, atol=1e-3)

    # --- bf16 MXU path (f32 accumulation); looser tolerance for bf16 rounding -
    basis_bf16, meta16 = make_combined_basis(
        harmonics, backcast_size, forecast_size, out_features, compute_dtype=jnp.bfloat16
    )
    backcast16, forecast16 = seasonality_basis_forward(theta, basis_bf16, meta16)
    jax.block_until_ready((backcast16, forecast16))
    np.testing.assert_allclose(np.asarray(backcast16), ref_back, rtol=1e-1, atol=1e-1)
    np.testing.assert_allclose(np.asarray(forecast16), ref_fore, rtol=1e-1, atol=1e-1)

    print("KERNEL_OK")
</pallas_src>

<mosaic_0001>
module attributes {stable_mosaic.version = 11 : i64} {
  func.func @_fused_basis_kernel(%arg0: i32, %arg1: memref<8x42xf32, #tpu.memory_space<vmem>>, %arg2: memref<42x256xf32, #tpu.memory_space<vmem>>, %arg3: memref<8x128xf32, #tpu.memory_space<vmem>>, %arg4: memref<8x128xf32, #tpu.memory_space<vmem>>) attributes {dimension_semantics = [#tpu.dimension_semantics<parallel>], iteration_bounds = array<i64: 1>, scalar_prefetch = 0 : i64, scratch_operands = 0 : i64, tpu.core_type = #tpu.core_type<tc>, window_params = [{transform_indices = @transform_0, window_bounds = array<i64: 8, 42>}, {pipeline_mode = #tpu.pipeline_mode<synchronous>, transform_indices = @transform_1, window_bounds = array<i64: 42, 256>}, {transform_indices = @transform_2, window_bounds = array<i64: 8, 128>}, {transform_indices = @transform_3, window_bounds = array<i64: 8, 128>}]} {
    %c0 = arith.constant 0 : index
    %c0_0 = arith.constant 0 : index
    %0 = vector.load %arg1[%c0, %c0_0] : memref<8x42xf32, #tpu.memory_space<vmem>>, vector<8x42xf32>
    %c0_1 = arith.constant 0 : index
    %c0_2 = arith.constant 0 : index
    %1 = vector.load %arg2[%c0_1, %c0_2] : memref<42x256xf32, #tpu.memory_space<vmem>>, vector<42x256xf32>
    %cst = arith.constant dense<0.000000e+00> : vector<8x256xf32>
    %2 = tpu.matmul %0, %1, %cst {dimension_numbers = #tpu.dot_dimension_numbers<[1], [0], [0], [1], [0, 0, 1, 1], [], []>} : vector<8x42xf32>, vector<42x256xf32>, vector<8x256xf32> -> vector<8x256xf32>
    %3 = vector.extract_strided_slice %2 {offsets = [0, 0], sizes = [8, 128], strides = [1, 1]} : vector<8x256xf32> to vector<8x128xf32>
    %c0_3 = arith.constant 0 : index
    %c0_4 = arith.constant 0 : index
    %4 = vector.load %arg3[%c0_3, %c0_4] : memref<8x128xf32, #tpu.memory_space<vmem>>, vector<8x128xf32>
    tpu.vector_store %arg3[%c0_3, %c0_4], %3 {strides = array<i32>} : memref<8x128xf32, #tpu.memory_space<vmem>>, vector<8x128xf32>,
    %5 = vector.extract_strided_slice %2 {offsets = [0, 128], sizes = [8, 128], strides = [1, 1]} : vector<8x256xf32> to vector<8x128xf32>
    %c0_5 = arith.constant 0 : index
    %c0_6 = arith.constant 0 : index
    %6 = vector.load %arg4[%c0_5, %c0_6] : memref<8x128xf32, #tpu.memory_space<vmem>>, vector<8x128xf32>
    tpu.vector_store %arg4[%c0_5, %c0_6], %5 {strides = array<i32>} : memref<8x128xf32, #tpu.memory_space<vmem>>, vector<8x128xf32>,
    return
  }
  func.func @transform_0(%arg0: i32) -> (i32, i32) {
    %c0_i32 = arith.constant 0 : i32
    %c0_i32_0 = arith.constant 0 : i32
    return %arg0, %c0_i32 : i32, i32
  }
  func.func @transform_1(%arg0: i32) -> (i32, i32) {
    %c0_i32 = arith.constant 0 : i32
    %c0_i32_0 = arith.constant 0 : i32
    %c0_i32_1 = arith.constant 0 : i32
    return %c0_i32, %c0_i32_0 : i32, i32
  }
  func.func @transform_2(%arg0: i32) -> (i32, i32) {
    %c0_i32 = arith.constant 0 : i32
    %c0_i32_0 = arith.constant 0 : i32
    return %arg0, %c0_i32 : i32, i32
  }
  func.func @transform_3(%arg0: i32) -> (i32, i32) {
    %c0_i32 = arith.constant 0 : i32
    %c0_i32_0 = arith.constant 0 : i32
    return %arg0, %c0_i32 : i32, i32
  }
}

</mosaic_0001>

<bundles_post_ra>
// kernel: tpu_custom_call.1
= control target key start
LH: loop header
LB: loop body
LE: loop exit
PB: predicated region body
PF: predicated region fallthrough
CT: control target
= control target key end

     0   :  { %9 = vsyncpa [#allocation3], 0  ;;  %s379_s0 = inlined_call_operand.hbm [shape: f32[8,42], index: 0, kind: input, shape index: {}]   ;;  %s380_s1 = inlined_call_operand.hbm [shape: f32[42,256], index: 1, kind: input, shape index: {}]   ;;  %s381_s2 = inlined_call_operand.hbm [shape: f32[8,128], index: 2, kind: output, shape index: {0}]   ;;  %s382_s3 = inlined_call_operand.hbm [shape: f32[8,128], index: 3, kind: output, shape index: {1}]  }
   0x1   :  { %10 = vsyncpa [#allocation6], 0 }
   0x2   :  { %11 = vsyncpa [#allocation4], 0 }
   0x3   :  { %12 = vsyncpa [#allocation9], 0  ;;  %s289_s12 = smov [#allocation2]   ;;  %s290_s14 = smov [#allocation5]  }
   0x4   :  { %s19_s13 = sshll.u32 %s289_s12, 4  ;;  %s28_s15 = sshll.u32 %s290_s14, 4  ;;  %s20_s13 = int_to_ptr.vmem [resolvable:$true] %s19_s13  ;;  %s317_s15 = int_to_ptr.vmem [resolvable:$true] %s28_s15 }
   0x5   :  { %s193_s18 = scalar_lea.hbm %s379_s0, 128 }
   0x6   :  { %p194_p0 = scmp.ne.s32.totalorder %s379_s0, %s193_s18  ;;  %p197_p1 = scmp.lt.u32.totalorder %s193_s18, %s379_s0 }
   0x8   :  { %p199_p2 = pnand %p197_p1, %p194_p0 }
   0xa   :  { %202 = shalt.err (!%p199_p2)
}
   0xb   :  { %s203_s23 = scalar_lea.vmem %s20_s13, 128  ;;  %p208_p4 = scmp.lt.s32.totalorder %s20_s13, %s20_s13 }
   0xc   :  { %p204_p3 = scmp.ne.s32.totalorder %s20_s13, %s203_s23  ;;  %p209_p5 = scmp.lt.s32.totalorder %s203_s23, %s203_s23 }
   0xe   :  { %p210_p6 = por %p209_p5, %p208_p4 }
  0x10   :  { %p211_p7 = pnand %p210_p6, %p204_p3 }
  0x12   :  { %214 = shalt.err (!%p211_p7)
}
  0x13   :  { %22 = dma.hbm_to_vmem [thread:$0]  %s379_s0, 128, %s20_s13, [#allocation3]  }
  0x14   :  { %s215_s28 = scalar_lea.hbm %s380_s1, 1536 }
  0x15   :  { %p216_p8 = scmp.ne.s32.totalorder %s380_s1, %s215_s28  ;;  %p219_p9 = scmp.lt.u32.totalorder %s215_s28, %s380_s1 }
  0x17   :  { %p221_p10 = pnand %p219_p9, %p216_p8 }
  0x19   :  { %224 = shalt.err (!%p221_p10)
}
  0x1a   :  { %s225_s6 = scalar_lea.vmem %s317_s15, 1536  ;;  %p230_p12 = scmp.lt.s32.totalorder %s317_s15, %s317_s15 }
  0x1b   :  { %p226_p11 = scmp.ne.s32.totalorder %s317_s15, %s225_s6  ;;  %p231_p13 = scmp.lt.s32.totalorder %s225_s6, %s225_s6 }
  0x1d   :  { %p232_p0 = por %p231_p13, %p230_p12 }
  0x1f   :  { %p233_p1 = pnand %p232_p0, %p226_p11 }
  0x21   :  { %236 = shalt.err (!%p233_p1)
}
  0x22   :  { %s291_s0 = smov 256   ;;  %s292_s7 = smov 16  }
  0x23   :  { %34 = dma.hbm_to_vmem [thread:$0]  %s380_s1, 1536, %s317_s15, [#allocation6], %s291_s0, %s291_s0, %s292_s7  }
  0x24   :  { %281 = dma.done.wait [#allocation3], 128  }
  0x25   :  { %282 = vsyncadd [#allocation3], 4294967168 }
  0x26   :  { %283 = dma.done.wait [#allocation6], 1536  }
  0x27   :  { %284 = vsyncadd [#allocation6], 4294965760  ;;  %v293_v0 = vmov 0.0   ;;  %v43_v1 = vld [vmem:[#allocation5 + $0x8] sm:$0xff]  ;;  %v45_v2 = vld [vmem:[#allocation5 + $0x18] sm:$0xff]  ;;  %vm58_vm0 = vcmask 1041408  }
  0x28   :  { %129 = vmatprep.mubr.f32.mxu0 %v293_v0  ;;  %v42_v3 = vld [vmem:[#allocation5] sm:$0xff]  ;;  %v171_v4 = vpack.c.bf16 %v45_v2, %v43_v1  ;;  %v44_v5 = vld [vmem:[#allocation5 + $0x10] sm:$0xff]  ;;  %v47_v6 = vld [vmem:[#allocation5 + $0x28] sm:$0xff]  ;;  %vm294_vm1 = vmmov 1   ;;  %vm54_vm3 = vcmask 343040   ;;  %s295_s1 = smov [#allocation7]  }
  0x29   :  { %v49_v7 = vld [vmem:[#allocation5 + $0x38] sm:$0xff]  ;;  %v173_v8 = vpack.c.bf16 %v44_v5, %v42_v3  ;;  %v46_v10 = vld [vmem:[#allocation5 + $0x20] sm:$0xff]  ;;  %v48_v11 = vld [vmem:[#allocation5 + $0x30] sm:$0xff]  ;;  %s144_s10 = sshll.u32 %s295_s1, 4  ;;  %s296_s11 = smov [#allocation8]   ;;  %s145_s10 = int_to_ptr.vmem [resolvable:$true] %s144_s10 }
  0x2a   :  { %v175_v9 = vpack.c.bf16 %v49_v7, %v47_v6  ;;  %v51_v12 = vld [vmem:[#allocation5 + $0x48] sm:$0xff]  ;;  %172 = vmatprep.subr.bf16.mxu0 %v171_v4  ;;  %v53_v13 = vld [vmem:[#allocation5 + $0x58] sm:$0x3]  ;;  %v177_v14 = vpack.c.bf16 %v48_v11, %v46_v10  ;;  %v50_v16 = vld [vmem:[#allocation5 + $0x40] sm:$0xff]  ;;  %s154_s12 = sshll.u32 %s296_s11, 4  ;;  %s237_s13 = scalar_lea.vmem %s145_s10, 128  ;;  %s348_s12 = int_to_ptr.vmem [resolvable:$true] %s154_s12 }
  0x2b   :  { %174 = vmatpush1.bf16.msra.mxu0 %v173_v8  ;;  %v179_v15 = vpack.c.bf16 %v53_v13, %v51_v12  ;;  %v52_v17 = vld [vmem:[#allocation5 + $0x50] sm:$0x3]  ;;  %vm180_vm2 = vmpackc.low %vm58_vm0, %vm294_vm1  ;;  %v41_v19 = vld [vmem:[#allocation2] sm:$0xff]  ;;  %p238_p2 = scmp.ne.s32.totalorder %s145_s10, %s237_s13  ;;  %p242_p3 = scmp.lt.s32.totalorder %s145_s10, %s145_s10 }
  0x2c   :  { %176 = vmatprep.subr.bf16.mxu0 %v175_v9  ;;  %v182_v18 = vpack.c.bf16 %v52_v17, %v50_v16  ;;  %p243_p4 = scmp.lt.s32.totalorder %s237_s13, %s237_s13 }
  0x2e   :  { %p244_p5 = por %p243_p4, %p242_p3 }
  0x2f   :  { %178 = vmatpush1.bf16.msra.mxu0 %v177_v14 }
  0x30   :  { %181 = vmatprep.subr.msk.bf16.mxu0 %vm180_vm2, %v179_v15  ;;  %p245_p6 = pnand %p244_p5, %p238_p2 }
  0x33   :  { %184 = vmatpush1.bf16.msk.msra.mxu0 %vm180_vm2, %v182_v18 }
  0x36   :  { %170 = vmatmul.mubr.msk.f32.vlgmr.msra.gmra.mrb[0].mxu0 %vm54_vm3, %v41_v19 }
 0x109   :  { %v131_v20 = vpop.f32.mrb[0].mxu0 }
 0x10a   :  { %136 = vst [vmem:[#allocation7] sm:$0xff] %v131_v20  ;;  %v133_v21 = vpop.f32.mrb[1].mxu0 }
 0x10b   :  { %137 = vst [vmem:[#allocation8] sm:$0xff] %v133_v21 }
 0x10c   :  { %248 = shalt.err (!%p245_p6)
}
 0x10d   :  { %s249_s16 = scalar_lea.hbm %s381_s2, 128 }
 0x10e   :  { %p250_p7 = scmp.ne.s32.totalorder %s381_s2, %s249_s16  ;;  %p253_p8 = scmp.lt.u32.totalorder %s249_s16, %s381_s2 }
 0x110   :  { %p255_p9 = pnand %p253_p8, %p250_p7 }
 0x112   :  { %258 = shalt.err (!%p255_p9)
}
 0x113   :  { %147 = dma.vmem_to_hbm [thread:$0]  %s145_s10, 128, %s381_s2, [#allocation4]  }
 0x114   :  { %s259_s23 = scalar_lea.vmem %s348_s12, 128  ;;  %p264_p11 = scmp.lt.s32.totalorder %s348_s12, %s348_s12 }
 0x115   :  { %p260_p10 = scmp.ne.s32.totalorder %s348_s12, %s259_s23  ;;  %p265_p12 = scmp.lt.s32.totalorder %s259_s23, %s259_s23 }
 0x117   :  { %p266_p13 = por %p265_p12, %p264_p11 }
 0x119   :  { %p267_p0 = pnand %p266_p13, %p260_p10 }
 0x11b   :  { %270 = shalt.err (!%p267_p0)
}
 0x11c   :  { %s271_s26 = scalar_lea.hbm %s382_s3, 128 }
 0x11d   :  { %p272_p1 = scmp.ne.s32.totalorder %s382_s3, %s271_s26  ;;  %p275_p2 = scmp.lt.u32.totalorder %s271_s26, %s382_s3 }
 0x11f   :  { %p277_p3 = pnand %p275_p2, %p272_p1 }
 0x121   :  { %280 = shalt.err (!%p277_p3)
}
 0x122   :  { %157 = dma.vmem_to_hbm [thread:$0]  %s348_s12, 128, %s382_s3, [#allocation9]  }
 0x123   :  { %285 = dma.done.wait [#allocation4], 128  }
 0x124   :  { %286 = vsyncadd [#allocation4], 4294967168 }
 0x125   :  { %287 = dma.done.wait [#allocation9], 128  }
 0x126   :  { %288 = vsyncadd [#allocation9], 4294967168 }
 0x127   :  { %164 = vsyncpa [#allocation3], 1 }
 0x128   :  { %165 = vsyncpa [#allocation6], 1 }
 0x129   :  { %166 = vsyncpa [#allocation4], 1 }
 0x12a   :  { %167 = vsyncpa [#allocation9], 1 }

</bundles_post_ra>
